<compile_context>
chip_gen: v7x
topology: tpu7x:2x2x1
jax: 0.10.0
libtpu: 0.0.40
codegen_flags: <defaults>
</compile_context>

<pallas_src>
import functools

import jax
import jax.numpy as jnp
import numpy as np
from jax.experimental import pallas as pl
from jax.experimental.pallas import tpu as pltpu

_LANE = 128      # lane width; rows axis tiling granularity
_SUB = 16        # bf16 sublane packing granularity (Cout / K padding)
_TN_MAX = 512    # max row tile (lane axis)


def _round_up(x, m):
    return ((x + m - 1) // m) * m


def _pick_row_tile(rows):
    """Row (lane-axis) tile: <=512, multiple of 128, prefer >=2 grid steps."""
    rows_128 = _round_up(rows, _LANE)
    tn = min(_TN_MAX, rows_128)
    # Prefer at least 2 grid steps so v7x's second TensorCore gets work.
    if rows_128 > _LANE and rows_128 <= tn:
        tn = max(_LANE, _round_up(rows_128 // 2, _LANE))
    return tn


def _matmul_bias_kernel(x_ref, w_ref, b_ref, o_ref):
    """One (Cout_p, Kp) @ (Kp, TN) MXU tile with fused bias.

    x_ref: (Kp, TN)     bf16  im2col patch columns (zero-padded K / rows)
    w_ref: (Kp is lane) (Cout_p, Kp) bf16  resident im2col weight (zero-padded)
    b_ref: (Cout_p, 1)  f32   bias (lane-broadcast inside the kernel)
    o_ref: (Cout_p, TN) f32   output tile (lane-dense, unmasked stores)
    """
    o_ref[...] = (
        jnp.dot(w_ref[...], x_ref[...], preferred_element_type=jnp.float32)
        + b_ref[...]
    )


@functools.partial(jax.jit, static_argnames=("kh", "kw", "cout"))
def _conv2d_forward(x_nchw, w2p, bp, *, kh, kw, cout):
    """Valid 2D conv via im2col + one gridded Pallas matmul. NCHW in, NCHW out."""
    N, Cin, H, W = x_nchw.shape
    Ho, Wo = H - kh + 1, W - kw + 1
    Cout_p, Kp = w2p.shape
    K = Cin * kh * kw
    rows = N * Ho * Wo

    # ---- wrapper-side im2col directly from NCHW, in bf16 (fused by XLA) -----
    # K ordering is (cin, kh, kw) so the weight is just w_oihw.reshape(cout, K).
    x_bf16 = x_nchw.astype(jnp.bfloat16)
    taps = [x_bf16[:, :, i:i + Ho, j:j + Wo]              # (N, Cin, Ho, Wo)
            for i in range(kh) for j in range(kw)]
    pat = jnp.stack(taps, axis=2)                         # (N, Cin, T, Ho, Wo)
    pat = jnp.transpose(pat, (1, 2, 0, 3, 4))             # (Cin, T, N, Ho, Wo)
    patches = pat.reshape(K, rows)                        # (K, N*Ho*Wo)

    tn = _pick_row_tile(rows)
    rows_p = _round_up(rows, tn)
    patches_p = jnp.pad(patches, ((0, Kp - K), (0, rows_p - rows)))

    # ---- single bf16 matmul on the MXU, gridded over row (lane) tiles -------
    flops = 2 * rows * K * cout
    bytes_accessed = (patches_p.size * 2          # bf16 patches
                      + w2p.size * 2              # bf16 weight
                      + bp.size * 4               # f32 bias
                      + Cout_p * rows_p * 4)      # f32 output
    out_p = pl.pallas_call(
        _matmul_bias_kernel,
        out_shape=jax.ShapeDtypeStruct((Cout_p, rows_p), jnp.float32),
        grid=(rows_p // tn,),
        in_specs=[
            pl.BlockSpec((Kp, tn), lambda i: (0, i)),       # patch column tile
            pl.BlockSpec((Cout_p, Kp), lambda i: (0, 0)),   # resident weight
            pl.BlockSpec((Cout_p, 1), lambda i: (0, 0)),    # resident bias
        ],
        out_specs=pl.BlockSpec((Cout_p, tn), lambda i: (0, i)),
        compiler_params=pltpu.CompilerParams(
            dimension_semantics=("parallel",)),             # megacore-shardable
        cost_estimate=pl.CostEstimate(
            flops=flops, transcendentals=0, bytes_accessed=bytes_accessed),
    )(patches_p, w2p, bp)

    # ---- epilogue: strip padding, restore NCHW (small transpose, fused) -----
    y = out_p[:cout, :rows].reshape(cout, N, Ho, Wo)
    return jnp.transpose(y, (1, 0, 2, 3))


def _init_conv_params(key, cin, cout, k):
    """Deterministic PyTorch-style (kaiming-uniform-ish) init; weights in OIHW."""
    kw_key, kb_key = jax.random.split(key)
    fan_in = cin * k * k
    bound = 1.0 / np.sqrt(fan_in)
    w = jax.random.uniform(kw_key, (cout, cin, k, k), jnp.float32, -bound, bound)
    b = jax.random.uniform(kb_key, (cout,), jnp.float32, -bound, bound)
    return w, b


def _pack_conv_params(w_oihw, b):
    """OIHW weights -> bf16 im2col weight (Cout_p, Kp) + f32 bias (Cout_p, 1).

    Cout goes on the sublane/M axis (padded to 16, not 128); K is padded only
    to the bf16 sublane granularity.  K row ordering is (cin, kh, kw), matching
    the patch construction in _conv2d_forward.  Padded rows/cols are zero.
    """
    cout, cin, kh, kw = w_oihw.shape
    K = cin * kh * kw
    Kp = _round_up(K, _SUB)
    Cout_p = _round_up(cout, _SUB)
    w2 = w_oihw.reshape(cout, K)                                   # (cout, cin*kh*kw)
    w2p = jnp.pad(w2, ((0, Cout_p - cout), (0, Kp - K))).astype(jnp.bfloat16)
    bp = jnp.pad(b, (0, Cout_p - cout)).reshape(Cout_p, 1).astype(jnp.float32)
    return {"w2p": w2p, "bp": bp, "kh": kh, "kw": kw, "cout": cout}


class MyModuleDictPallas:
    """JAX/Pallas equivalent of the PyTorch MyModuleDict module."""

    def __init__(self, key):
        k1, k2 = jax.random.split(key)
        w1, b1 = _init_conv_params(k1, 3, 16, 5)
        w2, b2 = _init_conv_params(k2, 16, 6, 5)
        # raw params kept only for the reference check
        self.params = {"conv1": (w1, b1), "conv2": (w2, b2)}
        # per-call layout work hoisted to init: packed bf16 im2col weights + bias
        self.packed = {"conv1": _pack_conv_params(w1, b1),
                       "conv2": _pack_conv_params(w2, b2)}

    def __call__(self, x_nchw, layer_name):
        p = self.packed[layer_name]
        return _conv2d_forward(x_nchw, p["w2p"], p["bp"],
                               kh=p["kh"], kw=p["kw"], cout=p["cout"])


def _reference_conv(x_nchw, w_oihw, b):
    y = jax.lax.conv_general_dilated(
        x_nchw, w_oihw, window_strides=(1, 1), padding="VALID",
        dimension_numbers=("NCHW", "OIHW", "NCHW"))
    return y + b[None, :, None, None]


if __name__ == "__main__":
    key = jax.random.PRNGKey(0)
    pkey, xkey = jax.random.split(key)

    model = MyModuleDictPallas(pkey)

    # conv1 path: x has 3 input channels
    x = jax.random.normal(xkey, (2, 3, 16, 16), jnp.float32)
    y1 = model(x, "conv1")
    jax.block_until_ready(y1)
    assert y1.shape == (2, 16, 12, 12), y1.shape

    # conv2 path: feed conv1's output (16 channels)
    y2 = model(y1, "conv2")
    jax.block_until_ready(y2)
    assert y2.shape == (2, 6, 8, 8), y2.shape

    # per-layer correctness vs. f32 XLA reference (bf16 operands -> looser tol)
    w1, b1 = model.params["conv1"]
    w2, b2 = model.params["conv2"]
    r1 = _reference_conv(x, w1, b1)
    r2 = _reference_conv(y1, w2, b2)
    np.testing.assert_allclose(np.asarray(y1), np.asarray(r1), rtol=2e-2, atol=2e-2)
    np.testing.assert_allclose(np.asarray(y2), np.asarray(r2), rtol=2e-2, atol=2e-2)

    print("KERNEL_OK")
</pallas_src>

<mosaic_0001>
module attributes {stable_mosaic.version = 11 : i64} {
  func.func @_matmul_bias_kernel(%arg0: i32, %arg1: memref<80x256xbf16, #tpu.memory_space<vmem>>, %arg2: memref<16x80xbf16, #tpu.memory_space<vmem>>, %arg3: memref<16x1xf32, #tpu.memory_space<vmem>>, %arg4: memref<16x256xf32, #tpu.memory_space<vmem>>) attributes {dimension_semantics = [#tpu.dimension_semantics<parallel>], iteration_bounds = array<i64: 2>, scalar_prefetch = 0 : i64, scratch_operands = 0 : i64, tpu.core_type = #tpu.core_type<tc>, window_params = [{transform_indices = @transform_0, window_bounds = array<i64: 80, 256>}, {pipeline_mode = #tpu.pipeline_mode<synchronous>, transform_indices = @transform_1, window_bounds = array<i64: 16, 80>}, {pipeline_mode = #tpu.pipeline_mode<synchronous>, transform_indices = @transform_2, window_bounds = array<i64: 16, 1>}, {transform_indices = @transform_3, window_bounds = array<i64: 16, 256>}]} {
    %c0 = arith.constant 0 : index
    %c0_0 = arith.constant 0 : index
    %0 = vector.load %arg2[%c0, %c0_0] : memref<16x80xbf16, #tpu.memory_space<vmem>>, vector<16x80xbf16>
    %c0_1 = arith.constant 0 : index
    %c0_2 = arith.constant 0 : index
    %1 = vector.load %arg1[%c0_1, %c0_2] : memref<80x256xbf16, #tpu.memory_space<vmem>>, vector<80x256xbf16>
    %cst = arith.constant dense<0.000000e+00> : vector<16x256xf32>
    %2 = tpu.matmul %0, %1, %cst {dimension_numbers = #tpu.dot_dimension_numbers<[1], [0], [0], [1], [0, 0, 1, 1], [], []>} : vector<16x80xbf16>, vector<80x256xbf16>, vector<16x256xf32> -> vector<16x256xf32>
    %c0_3 = arith.constant 0 : index
    %c0_4 = arith.constant 0 : index
    %3 = vector.load %arg3[%c0_3, %c0_4] : memref<16x1xf32, #tpu.memory_space<vmem>>, vector<16x1xf32>
    %4 = vector.broadcast %3 : vector<16x1xf32> to vector<16x256xf32>
    %5 = arith.addf %2, %4 : vector<16x256xf32>
    %c0_5 = arith.constant 0 : index
    %c0_6 = arith.constant 0 : index
    %6 = vector.load %arg4[%c0_5, %c0_6] : memref<16x256xf32, #tpu.memory_space<vmem>>, vector<16x256xf32>
    tpu.vector_store %arg4[%c0_5, %c0_6], %5 {strides = array<i32>} : memref<16x256xf32, #tpu.memory_space<vmem>>, vector<16x256xf32>,
    return
  }
  func.func @transform_0(%arg0: i32) -> (i32, i32) {
    %c0_i32 = arith.constant 0 : i32
    %c0_i32_0 = arith.constant 0 : i32
    return %c0_i32, %arg0 : i32, i32
  }
  func.func @transform_1(%arg0: i32) -> (i32, i32) {
    %c0_i32 = arith.constant 0 : i32
    %c0_i32_0 = arith.constant 0 : i32
    %c0_i32_1 = arith.constant 0 : i32
    return %c0_i32, %c0_i32_0 : i32, i32
  }
  func.func @transform_2(%arg0: i32) -> (i32, i32) {
    %c0_i32 = arith.constant 0 : i32
    %c0_i32_0 = arith.constant 0 : i32
    %c0_i32_1 = arith.constant 0 : i32
    return %c0_i32, %c0_i32_0 : i32, i32
  }
  func.func @transform_3(%arg0: i32) -> (i32, i32) {
    %c0_i32 = arith.constant 0 : i32
    %c0_i32_0 = arith.constant 0 : i32
    return %c0_i32, %arg0 : i32, i32
  }
}

</mosaic_0001>

<bundles_post_ra>
// kernel: _conv2d_forward.1
= control target key start
LH: loop header
LB: loop body
LE: loop exit
PB: predicated region body
PF: predicated region fallthrough
CT: control target
= control target key end

     0   :  { %s574_s12 = smov 0   ;;  %s576_s13 = smov 0   ;;  %s647_s0 = inlined_call_operand.vmem [shape: bf16[80,512], index: 0, kind: input, shape index: {}]   ;;  %s648_s1 = inlined_call_operand.vmem [shape: bf16[16,80], index: 1, kind: input, shape index: {}]   ;;  %s649_s2 = inlined_call_operand.vmem [shape: f32[16,1], index: 2, kind: input, shape index: {}]   ;;  %s650_s3 = inlined_call_operand.vmem [shape: f32[16,512], index: 3, kind: output, shape index: {}]  }
   0x1   :  { %s578_s14 = smov 0  }
   0x2 LB: > { %s458_s15 = sadd.s32 4294967295, %s551_s14   ;;  %s591_s16 = sadd.s32 1, %s551_s14   ;;  %s551_s14 = sphi %s578_s14, %s654_s14   ;;  %s547_s13 = sphi %s576_s13, %s653_s13   ;;  %s543_s12 = sphi %s574_s12, %s652_s12  }
   0x3   : > { %s17_s17 = ssub.s32 %s551_s14, %s591_s16  ;;  %s20_s18 = sadd.s32 1, %s547_s13 }
   0x4   : > { %p18_p0 = scmp.eq.s32.totalorder %s17_s17, 0  ;;  %p27_p1 = scmp.ne.s32.totalorder %s547_s13, %s543_s12 }
   0x5   : > { %p28_p2 = scmp.eq.s32.totalorder %s551_s14, 0  ;;  %p99_p3 = scmp.eq.s32.totalorder %s458_s15, 1 }
   0x6   : > { %s602_s19 = scalar_select %p18_p0, %s547_s13, %s20_s18  }
   0x7   : > { %p29_p4 = por %p28_p2, %p27_p1  ;;  %p604_p5 = por %p99_p3, %p27_p1 }
   0x8   : > { %p461_p6 = scmp.ge.s32.totalorder %s551_s14, 2 }
   0xa   : > { %127 = sbr.rel (%p461_p6) target bundleno = 26 (0x1a), region = 24 }
  0x11   : > { %130 = sbr.rel (!%p29_p4) target bundleno = 26 (0x1a), region = 28  ;;  %s132_s21 = sand.u32 (%p29_p4), 1, %s547_s13  }
  0x12   : > { %s483_s22 = sshll.u32 (%p29_p4), %s551_s14, 3  ;;  %s485_s23 = smul.u32 (%p29_p4), 80, %s132_s21 }
  0x13   : > { %s137_s26 = scalar_lea.vmem (%p29_p4), %s647_s0, %s483_s22 }
  0x14   : > { %v183_v0 = vld [vmem:[%s137_s26] sm:$0xff] (%p29_p4)  ;;  %v185_v1 = vld [vmem:[%s137_s26 + $0x10] sm:$0xff] (%p29_p4)  ;;  %s134_s27 = scalar_lea.vmem (%p29_p4), [#allocation2], %s485_s23 }
  0x15   : > { %v187_v2 = vld [vmem:[%s137_s26 + $0x20] sm:$0xff] (%p29_p4)  ;;  %v189_v3 = vld [vmem:[%s137_s26 + $0x30] sm:$0xff] (%p29_p4)  ;;  %184 = vst [vmem:[%s134_s27] sm:$0xff] (%p29_p4), %v183_v0  ;;  %186 = vst [vmem:[%s134_s27 + $0x8] sm:$0xff] (%p29_p4), %v185_v1 }
  0x16   : > { %v191_v4 = vld [vmem:[%s137_s26 + $0x40] sm:$0xff] (%p29_p4)  ;;  %v193_v5 = vld [vmem:[%s137_s26 + $0x50] sm:$0xff] (%p29_p4)  ;;  %188 = vst [vmem:[%s134_s27 + $0x10] sm:$0xff] (%p29_p4), %v187_v2  ;;  %190 = vst [vmem:[%s134_s27 + $0x18] sm:$0xff] (%p29_p4), %v189_v3 }
  0x17   : > { %192 = vst [vmem:[%s134_s27 + $0x20] sm:$0xff] (%p29_p4), %v191_v4  ;;  %194 = vst [vmem:[%s134_s27 + $0x28] sm:$0xff] (%p29_p4), %v193_v5  ;;  %v195_v6 = vld [vmem:[%s137_s26 + $0x60] sm:$0xff] (%p29_p4)  ;;  %v197_v7 = vld [vmem:[%s137_s26 + $0x70] sm:$0xff] (%p29_p4) }
  0x18   : > { %v199_v8 = vld [vmem:[%s137_s26 + $0x80] sm:$0xff]  ;;  %196 = vst [vmem:[%s134_s27 + $0x30] sm:$0xff] %v195_v6  ;;  %198 = vst [vmem:[%s134_s27 + $0x38] sm:$0xff] %v197_v7  ;;  %v201_v9 = vld [vmem:[%s137_s26 + $0x90] sm:$0xff] }
  0x19   : > { %200 = vst [vmem:[%s134_s27 + $0x40] sm:$0xff] %v199_v8  ;;  %202 = vst [vmem:[%s134_s27 + $0x48] sm:$0xff] %v201_v9 }
  0x1a PF: > { %p464_p7 = scmp.ge.s32.totalorder %s551_s14, 1  ;;  %p207_p8 = scmp.lt.s32.totalorder %s551_s14, 3 }
  0x1c   : > { %p208_p9 = pnand %p464_p7, %p207_p8 }
  0x1d   : > { %s214_s28 = sand.u32 (!%p208_p9), 1, %s543_s12   ;;  %v553_v10 = vmov (!%p208_p9), 0   ;;  %v251_v11 = vld [vmem:[%s649_s2] sm:$0xff] (!%p208_p9)  ;;  %v252_v12 = vld [vmem:[%s649_s2 + $0x8] sm:$0xff] (!%p208_p9)  ;;  %vm318_vm0 = vcmask (!%p208_p9), 654336  }
  0x1e   : > { %211 = sbr.rel (%p208_p9) target bundleno = 281 (0x119), region = 66  ;;  %354 = vmatprep.mubr.bf16.mxu0 (!%p208_p9), %v553_v10  ;;  %512 = vset.pattern.permute.xlu0 (!%p208_p9), %v553_v10  ;;  %v528_v23 = vld [vmem:[%s648_s1] sm:$0xff] (!%p208_p9)   ;;  %s465_s10 = sshll.u32 (!%p208_p9), %s214_s28, 5 }
  0x1f   : > { %s486_s29 = smul.u32 (!%p208_p9), 80, %s214_s28  ;;  %255 = vperm.xlu0 (!%p208_p9), %512, %v251_v11   ;;  %s235_s11 = scalar_lea.vmem (!%p208_p9), [#allocation3], %s465_s10 }
  0x21   : > { %s216_s7 = scalar_lea.vmem (!%p208_p9), [#allocation2], %s486_s29 }
  0x22   : > { %v513_v13 = vld [vmem:[%s216_s7 + $0x4] ss:$8 sps:$4 sm:$0xff] (!%p208_p9)   ;;  %v515_v14 = vld [vmem:[%s216_s7] ss:$8 sps:$4 sm:$0xff] (!%p208_p9)   ;;  %v516_v15 = vld [vmem:[%s216_s7 + $0x14] ss:$8 sps:$4 sm:$0xff] (!%p208_p9)  }
  0x23   : > { %322 = vmatprep.subr.bf16.mxu0 (!%p208_p9), %v513_v13  ;;  %260 = vperm.xlu0 (!%p208_p9), %512, %v252_v12   ;;  %v518_v16 = vld [vmem:[%s216_s7 + $0x10] ss:$8 sps:$4 sm:$0xff] (!%p208_p9)   ;;  %v519_v17 = vld [vmem:[%s216_s7 + $0x24] ss:$8 sps:$4 sm:$0xff] (!%p208_p9)   ;;  %v521_v18 = vld [vmem:[%s216_s7 + $0x20] ss:$8 sps:$4 sm:$0xff] (!%p208_p9)  }
  0x24   : > { %323 = vmatpush1.bf16.msra.mxu0 (!%p208_p9), %v515_v14  ;;  %v522_v19 = vld [vmem:[%s216_s7 + $0x34] ss:$8 sps:$4 sm:$0xff] (!%p208_p9)   ;;  %v524_v20 = vld [vmem:[%s216_s7 + $0x30] ss:$8 sps:$4 sm:$0xff] (!%p208_p9)   ;;  %v525_v21 = vld [vmem:[%s216_s7 + $0x44] ss:$8 sps:$4 sm:$0xff] (!%p208_p9)  }
  0x25   : > { %324 = vmatprep.subr.bf16.mxu0 %v516_v15  ;;  %v527_v22 = vld [vmem:[%s216_s7 + $0x40] ss:$8 sps:$4 sm:$0xff]   ;;  %s484_s12 = sshll.u32 (%p604_p5), %s458_s15, 4 }
  0x26   : > { %s378_s21 = scalar_lea.vmem (%p604_p5), %s650_s3, %s484_s12 }
  0x28   : > { %325 = vmatpush1.bf16.msra.mxu0 %v518_v16 }
  0x29   : > { %326 = vmatprep.subr.bf16.mxu0 %v519_v17 }
  0x2c   : > { %327 = vmatpush1.bf16.msra.mxu0 %v521_v18 }
  0x2d   : > { %328 = vmatprep.subr.bf16.mxu0 %v522_v19 }
  0x30   : > { %329 = vmatpush1.bf16.msra.mxu0 %v524_v20 }
  0x31   : > { %330 = vmatprep.subr.bf16.mxu0 %v525_v21 }
  0x34   : > { %331 = vmatpush1.bf16.msra.mxu0 %v527_v22 }
  0x37   : > { %477 = vmatmul.mubr.msk.bf16.vlgmr.msra.gmra.mrb[0].mxu0 %vm318_vm0, %v528_v23 }
  0x9e   : > { %v256_v24 = vpop.permute.xlu0 %255 }
  0xa2   : > { %v261_v28 = vpop.permute.xlu0 %260 }
 0x10a   : > { %v356_v25 = vpop.f32.mrb[0].mxu0  ;;  %375 = sbr.rel (!%p604_p5) target bundleno = 281 (0x119), region = 74 }
 0x10b   : > { %v357_v26 = vadd.f32 %v356_v25, %v256_v24  ;;  %v358_v27 = vpop.f32.mrb[1].mxu0 }
 0x10c   : > { %v359_v29 = vadd.f32 %v358_v27, %v256_v24  ;;  %v360_v30 = vpop.f32.mrb[2].mxu0 }
 0x10d   : > { %365 = vst [vmem:[%s235_s11] sm:$0xff] %v357_v26  ;;  %v361_v31 = vadd.f32 %v360_v30, %v261_v28  ;;  %v362_v32 = vpop.f32.mrb[3].mxu0 }
 0x10e   : > { %366 = vst [vmem:[%s235_s11 + $0x8] sm:$0xff] %v359_v29  ;;  %v363_v33 = vadd.f32 %v362_v32, %v261_v28 }
 0x10f   : > { %367 = vst [vmem:[%s235_s11 + $0x10] sm:$0xff] %v361_v31 }
 0x110   : > { %368 = vst [vmem:[%s235_s11 + $0x18] sm:$0xff] %v363_v33 }
 0x114   : > { %v391_v34 = vld [vmem:[%s235_s11] sm:$0xff] }
 0x115   : > { %v393_v35 = vld [vmem:[%s235_s11 + $0x8] sm:$0xff]  ;;  %392 = vst [vmem:[%s378_s21] sm:$0xff] %v391_v34 }
 0x116   : > { %v395_v36 = vld [vmem:[%s235_s11 + $0x10] sm:$0xff]  ;;  %394 = vst [vmem:[%s378_s21 + $0x8] sm:$0xff] %v393_v35 }
 0x117   : > { %v397_v37 = vld [vmem:[%s235_s11 + $0x18] sm:$0xff]  ;;  %396 = vst [vmem:[%s378_s21 + $0x20] sm:$0xff] %v395_v36 }
 0x118   : > { %398 = vst [vmem:[%s378_s21 + $0x28] sm:$0xff] %v397_v37 }
 0x119 PF: > { %p10_p10 = scmp.ge.s32.totalorder %s591_s16, 4   ;;  %s652_s12 = smov %s547_s13 }
 0x11a   : > { %s653_s13 = smov %s602_s19  ;;  %s654_s14 = smov %s591_s16 }
 0x11b   :  { %12 = sbr.rel (!%p10_p10) target bundleno = 2 (0x2), region = 128 }

</bundles_post_ra>
